<compile_context>
chip_gen: v7x
topology: tpu7x:2x2x1
jax: 0.10.0
libtpu: 0.0.40
codegen_flags: <defaults>
</compile_context>

<pallas_src>
import functools

import jax
import jax.numpy as jnp
from jax.experimental import pallas as pl
from jax.experimental.pallas import tpu as pltpu


def _round_up(v, m):
    return ((v + m - 1) // m) * m


def _ca_cga_kernel(inv_hw, w_ref, x_ref, y_ref, w1t_ref, b1_ref, w2t_ref,
                   b2_ref, o_ref, acc_ref):
    # inv_hw  : static Python float, 1 / (H*W)
    # w_ref   : (1, 1)   SMEM scalar (the nn.Parameter `weight`)
    # x_ref   : (n_blk, C, hw_tile) VMEM   streamed tile of x
    # y_ref   : (n_blk, C, hw_tile) VMEM   streamed tile of y
    # w1t_ref : (C, Ch)  VMEM  first 1x1 conv weight, pre-transposed
    # b1_ref  : (1, Ch)
    # w2t_ref : (Ch, C)  VMEM  second 1x1 conv weight, pre-transposed
    # b2_ref  : (1, C)
    # o_ref   : (n_blk, C)  output block (written on last reduction step)
    # acc_ref : (n_blk, C)  f32 accumulator scratch
    k = pl.program_id(1)

    @pl.when(k == 0)
    def _():
        acc_ref[...] = jnp.zeros_like(acc_ref)

    w = w_ref[0, 0]
    sx = jnp.sum(x_ref[...], axis=-1)              # (n_blk, C)
    sy = jnp.sum(y_ref[...], axis=-1)              # (n_blk, C)
    acc_ref[...] += w * sx + (1.0 - w) * sy

    @pl.when(k == pl.num_programs(1) - 1)
    def _():
        combined = acc_ref[...] * inv_hw           # mean over the real H*W
        h = jnp.dot(combined, w1t_ref[...],
                    preferred_element_type=jnp.float32)
        h = jnp.maximum(h + b1_ref[...], 0.0)      # ReLU
        out = jnp.dot(h, w2t_ref[...],
                      preferred_element_type=jnp.float32)
        o_ref[...] = (out + b2_ref[...]).astype(o_ref.dtype)


def channel_attention_cga(x, y, weight, w1, b1, w2, b2):
    """x, y: (N, C, H, W) float32.  Returns (N, C, 1, 1), matching PyTorch."""
    N, C, H, W = x.shape
    hw = H * W
    hidden = w1.shape[0]

    # ---- tiling decisions -------------------------------------------------
    # Batch block: whole batch if small, else 8-row blocks (sublane aligned).
    n_blk = N if N <= 8 else 8
    n_p = _round_up(N, n_blk)

    # Spatial tile: multiple of 128 lanes, capped so one streamed input tile
    # stays ~<= 2 MiB (x and y are each double-buffered by the pipeline),
    # which is safe on v7x's 64 MiB VMEM and leaves v5e/v6e with headroom.
    max_tile_elems = (2 * 1024 * 1024) // 4
    cap = max(128, ((max_tile_elems // max(n_blk * C, 1)) // 128) * 128)
    hw_tile = min(_round_up(hw, 128), cap, 2048)
    hw_p = _round_up(hw, hw_tile)

    grid = (n_p // n_blk, hw_p // hw_tile)

    # ---- layout prep (wrapper-side, outside the hot loop) ------------------
    x_flat = x.reshape(N, C, hw)
    y_flat = y.reshape(N, C, hw)
    if n_p != N or hw_p != hw:
        pad = ((0, n_p - N), (0, 0), (0, hw_p - hw))
        x_flat = jnp.pad(x_flat, pad)              # zero pad: sum unbiased
        y_flat = jnp.pad(y_flat, pad)

    w_scalar = jnp.asarray(weight, jnp.float32).reshape(1, 1)
    w1t = jnp.asarray(w1, jnp.float32).T           # (C, Ch)  pre-transposed
    w2t = jnp.asarray(w2, jnp.float32).T           # (Ch, C)  pre-transposed
    b1_row = jnp.asarray(b1, jnp.float32).reshape(1, hidden)
    b2_row = jnp.asarray(b2, jnp.float32).reshape(1, C)

    # ---- specs --------------------------------------------------------------
    stream_spec = pl.BlockSpec((n_blk, C, hw_tile), lambda n, k: (n, 0, k))
    w_spec = pl.BlockSpec((1, 1), lambda n, k: (0, 0),
                          memory_space=pltpu.MemorySpace.SMEM)
    # Weights / biases: constant index_map -> DMA'd once, stay resident.
    w1t_spec = pl.BlockSpec((C, hidden), lambda n, k: (0, 0))
    b1_spec = pl.BlockSpec((1, hidden), lambda n, k: (0, 0))
    w2t_spec = pl.BlockSpec((hidden, C), lambda n, k: (0, 0))
    b2_spec = pl.BlockSpec((1, C), lambda n, k: (0, 0))
    out_spec = pl.BlockSpec((n_blk, C), lambda n, k: (n, 0))

    kernel = functools.partial(_ca_cga_kernel, float(1.0 / hw))

    out = pl.pallas_call(
        kernel,
        out_shape=jax.ShapeDtypeStruct((n_p, C), jnp.float32),
        grid=grid,
        in_specs=[w_spec, stream_spec, stream_spec,
                  w1t_spec, b1_spec, w2t_spec, b2_spec],
        out_specs=out_spec,
        scratch_shapes=[pltpu.VMEM((n_blk, C), jnp.float32)],
        compiler_params=pltpu.CompilerParams(
            dimension_semantics=("parallel", "arbitrary"),
            vmem_limit_bytes=48 * 1024 * 1024,
        ),
    )(w_scalar, x_flat, y_flat, w1t, b1_row, w2t, b2_row)

    return out[:N].reshape(N, C, 1, 1)


def init_params(key, dim, reduction=8):
    """Deterministic synthetic parameters matching the module's shapes."""
    hidden = dim // reduction
    k1, k2, k3, k4 = jax.random.split(key, 4)
    # Conv2d(dim, hidden, 1) weight (hidden, dim, 1, 1) -> (hidden, dim)
    w1 = jax.random.normal(k1, (hidden, dim), jnp.float32) * 0.1
    b1 = jax.random.normal(k2, (hidden,), jnp.float32) * 0.1
    # Conv2d(hidden, dim, 1) weight (dim, hidden, 1, 1) -> (dim, hidden)
    w2 = jax.random.normal(k3, (dim, hidden), jnp.float32) * 0.1
    b2 = jax.random.normal(k4, (dim,), jnp.float32) * 0.1
    # nn.Parameter(torch.ones(1))
    weight = jnp.ones((1,), jnp.float32)
    return weight, w1, b1, w2, b2


def _reference(x, y, weight, w1, b1, w2, b2):
    """Pure-JAX reference of the PyTorch forward."""
    x_gap = jnp.mean(x, axis=(2, 3))               # (N, C)
    y_gap = jnp.mean(y, axis=(2, 3))
    w = weight.reshape(())
    combined = x_gap * w + y_gap * (1.0 - w)
    h = jnp.maximum(combined @ w1.T + b1, 0.0)
    out = h @ w2.T + b2
    return out[:, :, None, None]


if __name__ == "__main__":
    key = jax.random.PRNGKey(0)
    kx, ky, kp = jax.random.split(key, 3)

    # dim=16, reduction=8 -> hidden=2
    N, C, H, W = 2, 16, 16, 16
    x = jax.random.normal(kx, (N, C, H, W), jnp.float32)
    y = jax.random.normal(ky, (N, C, H, W), jnp.float32)
    weight, w1, b1, w2, b2 = init_params(kp, C, reduction=8)

    out = channel_attention_cga(x, y, weight, w1, b1, w2, b2)
    out = jax.block_until_ready(out)
    ref = _reference(x, y, weight, w1, b1, w2, b2)
    assert out.shape == (N, C, 1, 1)
    assert jnp.allclose(out, ref, atol=1e-4, rtol=1e-4)

    # Second config: non-128-multiple spatial size (exercises zero-pad path).
    N2, H2, W2 = 3, 9, 9
    x2 = jax.random.normal(kx, (N2, C, H2, W2), jnp.float32)
    y2 = jax.random.normal(ky, (N2, C, H2, W2), jnp.float32)
    out2 = channel_attention_cga(x2, y2, weight, w1, b1, w2, b2)
    out2 = jax.block_until_ready(out2)
    ref2 = _reference(x2, y2, weight, w1, b1, w2, b2)
    assert out2.shape == (N2, C, 1, 1)
    assert jnp.allclose(out2, ref2, atol=1e-4, rtol=1e-4)

    print("KERNEL_OK")
</pallas_src>

<mosaic_0001>
module attributes {stable_mosaic.version = 11 : i64} {
  func.func @_ca_cga_kernel(%arg0: i32, %arg1: i32, %arg2: memref<1x1xf32, #tpu.memory_space<smem>>, %arg3: memref<2x16x256xf32, #tpu.memory_space<vmem>>, %arg4: memref<2x16x256xf32, #tpu.memory_space<vmem>>, %arg5: memref<16x2xf32, #tpu.memory_space<vmem>>, %arg6: memref<1x2xf32, #tpu.memory_space<vmem>>, %arg7: memref<2x16xf32, #tpu.memory_space<vmem>>, %arg8: memref<1x16xf32, #tpu.memory_space<vmem>>, %arg9: memref<2x16xf32, #tpu.memory_space<vmem>>, %arg10: memref<2x16xf32, #tpu.memory_space<vmem>>) attributes {dimension_semantics = [#tpu.dimension_semantics<parallel>, #tpu.dimension_semantics<arbitrary>], iteration_bounds = array<i64: 1, 1>, scalar_prefetch = 0 : i64, scratch_operands = 1 : i64, tpu.core_type = #tpu.core_type<tc>, window_params = [{transform_indices = @transform_0, window_bounds = array<i64: 1, 1>}, {transform_indices = @transform_1, window_bounds = array<i64: 2, 16, 256>}, {transform_indices = @transform_2, window_bounds = array<i64: 2, 16, 256>}, {pipeline_mode = #tpu.pipeline_mode<synchronous>, transform_indices = @transform_3, window_bounds = array<i64: 16, 2>}, {pipeline_mode = #tpu.pipeline_mode<synchronous>, transform_indices = @transform_4, window_bounds = array<i64: 1, 2>}, {pipeline_mode = #tpu.pipeline_mode<synchronous>, transform_indices = @transform_5, window_bounds = array<i64: 2, 16>}, {pipeline_mode = #tpu.pipeline_mode<synchronous>, transform_indices = @transform_6, window_bounds = array<i64: 1, 16>}, {transform_indices = @transform_7, window_bounds = array<i64: 2, 16>}]} {
    %c0_i32 = arith.constant 0 : i32
    %0 = arith.cmpi eq, %arg1, %c0_i32 : i32
    %1 = arith.extui %0 : i1 to i32
    %c0_i32_0 = arith.constant 0 : i32
    %2 = arith.cmpi ne, %1, %c0_i32_0 : i32
    scf.if %2 {
      %cst_16 = arith.constant 0.000000e+00 : f32
      %20 = vector.broadcast %cst_16 : f32 to vector<2x16xf32>
      %c0_17 = arith.constant 0 : index
      %c0_18 = arith.constant 0 : index
      %21 = vector.load %arg10[%c0_17, %c0_18] : memref<2x16xf32, #tpu.memory_space<vmem>>, vector<2x16xf32>
      tpu.vector_store %arg10[%c0_17, %c0_18], %20 {strides = array<i32>} : memref<2x16xf32, #tpu.memory_space<vmem>>, vector<2x16xf32>,
    } else {
    }
    %c0 = arith.constant 0 : index
    %c0_1 = arith.constant 0 : index
    %3 = memref.load %arg2[%c0, %c0_1] : memref<1x1xf32, #tpu.memory_space<smem>>
    %c0_2 = arith.constant 0 : index
    %c0_3 = arith.constant 0 : index
    %c0_4 = arith.constant 0 : index
    %4 = vector.load %arg3[%c0_2, %c0_3, %c0_4] : memref<2x16x256xf32, #tpu.memory_space<vmem>>, vector<2x16x256xf32>
    %cst = arith.constant dense<0.000000e+00> : vector<2x16xf32>
    %5 = vector.multi_reduction <add>, %4, %cst [2] : vector<2x16x256xf32> to vector<2x16xf32>
    %c0_5 = arith.constant 0 : index
    %c0_6 = arith.constant 0 : index
    %c0_7 = arith.constant 0 : index
    %6 = vector.load %arg4[%c0_5, %c0_6, %c0_7] : memref<2x16x256xf32, #tpu.memory_space<vmem>>, vector<2x16x256xf32>
    %cst_8 = arith.constant dense<0.000000e+00> : vector<2x16xf32>
    %7 = vector.multi_reduction <add>, %6, %cst_8 [2] : vector<2x16x256xf32> to vector<2x16xf32>
    %c0_9 = arith.constant 0 : index
    %c0_10 = arith.constant 0 : index
    %8 = vector.load %arg10[%c0_9, %c0_10] : memref<2x16xf32, #tpu.memory_space<vmem>>, vector<2x16xf32>
    %9 = vector.broadcast %3 : f32 to vector<2x16xf32>
    %10 = arith.mulf %9, %5 : vector<2x16xf32>
    %cst_11 = arith.constant 1.000000e+00 : f32
    %11 = arith.subf %cst_11, %3 : f32
    %12 = vector.broadcast %11 : f32 to vector<2x16xf32>
    %13 = arith.mulf %12, %7 : vector<2x16xf32>
    %14 = arith.addf %10, %13 : vector<2x16xf32>
    %15 = arith.addf %8, %14 : vector<2x16xf32>
    %c0_12 = arith.constant 0 : index
    %c0_13 = arith.constant 0 : index
    %16 = vector.load %arg10[%c0_12, %c0_13] : memref<2x16xf32, #tpu.memory_space<vmem>>, vector<2x16xf32>
    tpu.vector_store %arg10[%c0_12, %c0_13], %15 {strides = array<i32>} : memref<2x16xf32, #tpu.memory_space<vmem>>, vector<2x16xf32>,
    %c0_i32_14 = arith.constant 0 : i32
    %17 = arith.cmpi eq, %arg1, %c0_i32_14 : i32
    %18 = arith.extui %17 : i1 to i32
    %c0_i32_15 = arith.constant 0 : i32
    %19 = arith.cmpi ne, %18, %c0_i32_15 : i32
    scf.if %19 {
      %c0_16 = arith.constant 0 : index
      %c0_17 = arith.constant 0 : index
      %20 = vector.load %arg10[%c0_16, %c0_17] : memref<2x16xf32, #tpu.memory_space<vmem>>, vector<2x16xf32>
      %cst_18 = arith.constant 3.906250e-03 : f32
      %21 = vector.broadcast %cst_18 : f32 to vector<2x16xf32>
      %22 = arith.mulf %20, %21 : vector<2x16xf32>
      %c0_19 = arith.constant 0 : index
      %c0_20 = arith.constant 0 : index
      %23 = vector.load %arg5[%c0_19, %c0_20] : memref<16x2xf32, #tpu.memory_space<vmem>>, vector<16x2xf32>
      %cst_21 = arith.constant dense<0.000000e+00> : vector<2x2xf32>
      %24 = tpu.matmul %22, %23, %cst_21 {dimension_numbers = #tpu.dot_dimension_numbers<[1], [0], [0], [1], [0, 0, 1, 1], [], []>} : vector<2x16xf32>, vector<16x2xf32>, vector<2x2xf32> -> vector<2x2xf32>
      %c0_22 = arith.constant 0 : index
      %c0_23 = arith.constant 0 : index
      %25 = vector.load %arg6[%c0_22, %c0_23] : memref<1x2xf32, #tpu.memory_space<vmem>>, vector<1x2xf32>
      %26 = vector.broadcast %25 : vector<1x2xf32> to vector<2x2xf32>
      %27 = arith.addf %24, %26 : vector<2x2xf32>
      %cst_24 = arith.constant 0.000000e+00 : f32
      %28 = vector.broadcast %cst_24 : f32 to vector<2x2xf32>
      %29 = arith.maximumf %27, %28 : vector<2x2xf32>
      %c0_25 = arith.constant 0 : index
      %c0_26 = arith.constant 0 : index
      %30 = vector.load %arg7[%c0_25, %c0_26] : memref<2x16xf32, #tpu.memory_space<vmem>>, vector<2x16xf32>
      %cst_27 = arith.constant dense<0.000000e+00> : vector<2x16xf32>
      %31 = tpu.matmul %29, %30, %cst_27 {dimension_numbers = #tpu.dot_dimension_numbers<[1], [0], [0], [1], [0, 0, 1, 1], [], []>} : vector<2x2xf32>, vector<2x16xf32>, vector<2x16xf32> -> vector<2x16xf32>
      %c0_28 = arith.constant 0 : index
      %c0_29 = arith.constant 0 : index
      %32 = vector.load %arg8[%c0_28, %c0_29] : memref<1x16xf32, #tpu.memory_space<vmem>>, vector<1x16xf32>
      %33 = vector.broadcast %32 : vector<1x16xf32> to vector<2x16xf32>
      %34 = arith.addf %31, %33 : vector<2x16xf32>
      %c0_30 = arith.constant 0 : index
      %c0_31 = arith.constant 0 : index
      %35 = vector.load %arg9[%c0_30, %c0_31] : memref<2x16xf32, #tpu.memory_space<vmem>>, vector<2x16xf32>
      tpu.vector_store %arg9[%c0_30, %c0_31], %34 {strides = array<i32>} : memref<2x16xf32, #tpu.memory_space<vmem>>, vector<2x16xf32>,
    } else {
    }
    return
  }
  func.func @transform_0(%arg0: i32, %arg1: i32) -> (i32, i32) {
    %c0_i32 = arith.constant 0 : i32
    %c0_i32_0 = arith.constant 0 : i32
    %c0_i32_1 = arith.constant 0 : i32
    return %c0_i32, %c0_i32_0 : i32, i32
  }
  func.func @transform_1(%arg0: i32, %arg1: i32) -> (i32, i32, i32) {
    %c0_i32 = arith.constant 0 : i32
    %c0_i32_0 = arith.constant 0 : i32
    return %arg0, %c0_i32, %arg1 : i32, i32, i32
  }
  func.func @transform_2(%arg0: i32, %arg1: i32) -> (i32, i32, i32) {
    %c0_i32 = arith.constant 0 : i32
    %c0_i32_0 = arith.constant 0 : i32
    return %arg0, %c0_i32, %arg1 : i32, i32, i32
  }
  func.func @transform_3(%arg0: i32, %arg1: i32) -> (i32, i32) {
    %c0_i32 = arith.constant 0 : i32
    %c0_i32_0 = arith.constant 0 : i32
    %c0_i32_1 = arith.constant 0 : i32
    return %c0_i32, %c0_i32_0 : i32, i32
  }
  func.func @transform_4(%arg0: i32, %arg1: i32) -> (i32, i32) {
    %c0_i32 = arith.constant 0 : i32
    %c0_i32_0 = arith.constant 0 : i32
    %c0_i32_1 = arith.constant 0 : i32
    return %c0_i32, %c0_i32_0 : i32, i32
  }
  func.func @transform_5(%arg0: i32, %arg1: i32) -> (i32, i32) {
    %c0_i32 = arith.constant 0 : i32
    %c0_i32_0 = arith.constant 0 : i32
    %c0_i32_1 = arith.constant 0 : i32
    return %c0_i32, %c0_i32_0 : i32, i32
  }
  func.func @transform_6(%arg0: i32, %arg1: i32) -> (i32, i32) {
    %c0_i32 = arith.constant 0 : i32
    %c0_i32_0 = arith.constant 0 : i32
    %c0_i32_1 = arith.constant 0 : i32
    return %c0_i32, %c0_i32_0 : i32, i32
  }
  func.func @transform_7(%arg0: i32, %arg1: i32) -> (i32, i32) {
    %c0_i32 = arith.constant 0 : i32
    %c0_i32_0 = arith.constant 0 : i32
    return %arg0, %c0_i32 : i32, i32
  }
}

</mosaic_0001>

<bundles_post_ra>
// kernel: tpu_custom_call.1
= control target key start
LH: loop header
LB: loop body
LE: loop exit
PB: predicated region body
PF: predicated region fallthrough
CT: control target
= control target key end

     0   :  { %13 = vsyncpa [#allocation5], 0  ;;  %s556_s0 = inlined_call_operand.<no memory space> [shape: f32[1,1], index: 0, kind: input, shape index: {}]   ;;  %s557_s1 = inlined_call_operand.hbm [shape: f32[2,16,256], index: 1, kind: input, shape index: {}]   ;;  %s558_s2 = inlined_call_operand.hbm [shape: f32[2,16,256], index: 2, kind: input, shape index: {}]   ;;  %s559_s3 = inlined_call_operand.vmem [shape: f32[16,2], index: 3, kind: input, shape index: {}]   ;;  %s560_s4 = inlined_call_operand.vmem [shape: f32[1,2], index: 4, kind: input, shape index: {}]   ;;  %s561_s5 = inlined_call_operand.vmem [shape: f32[2,16], index: 5, kind: input, shape index: {}]   ;;  %s562_s6 = inlined_call_operand.vmem [shape: f32[1,16], index: 6, kind: input, shape index: {}]   ;;  %s563_s7 = inlined_call_operand.hbm [shape: f32[2,16], index: 7, kind: output, shape index: {}]  }
   0x1   :  { %14 = vsyncpa [#allocation8], 0 }
   0x2   :  { %15 = vsyncpa [#allocation6], 0  ;;  %s448_s24 = smov [#allocation4]   ;;  %s376_s28 = scalar_lea.hbm %s557_s1, 1024 }
   0x3   :  { %s23_s25 = sshll.u32 %s448_s24, 4  ;;  %p377_p0 = scmp.ne.s32.totalorder %s557_s1, %s376_s28  ;;  %s24_s25 = int_to_ptr.vmem [resolvable:$true] %s23_s25 }
   0x4   :  { %p380_p1 = scmp.lt.u32.totalorder %s376_s28, %s557_s1 }
   0x6   :  { %p382_p2 = pnand %p380_p1, %p377_p0 }
   0x8   :  { %385 = shalt.err (!%p382_p2)
}
   0x9   :  { %s386_s10 = scalar_lea.vmem %s24_s25, 1024  ;;  %p391_p4 = scmp.lt.s32.totalorder %s24_s25, %s24_s25 }
   0xa   :  { %p387_p3 = scmp.ne.s32.totalorder %s24_s25, %s386_s10  ;;  %p392_p5 = scmp.lt.s32.totalorder %s386_s10, %s386_s10 }
   0xc   :  { %p393_p6 = por %p392_p5, %p391_p4 }
   0xe   :  { %p394_p7 = pnand %p393_p6, %p387_p3 }
  0x10   :  { %397 = shalt.err (!%p394_p7)
}
  0x11   :  { %s449_s11 = smov 256   ;;  %s450_s12 = smov 16  }
  0x12   :  { %29 = dma.hbm_to_vmem [thread:$0]  %s557_s1, 1024, %s24_s25, [#allocation5], %s449_s11, %s449_s11, %s450_s12  }
  0x13   :  { %s451_s15 = smov [#allocation7]   ;;  %s398_s19 = scalar_lea.hbm %s558_s2, 1024 }
  0x14   :  { %s35_s16 = sshll.u32 %s451_s15, 4  ;;  %p399_p8 = scmp.ne.s32.totalorder %s558_s2, %s398_s19  ;;  %s36_s16 = int_to_ptr.vmem [resolvable:$true] %s35_s16 }
  0x15   :  { %p402_p9 = scmp.lt.u32.totalorder %s398_s19, %s558_s2 }
  0x17   :  { %p404_p10 = pnand %p402_p9, %p399_p8 }
  0x19   :  { %407 = shalt.err (!%p404_p10)
}
  0x1a   :  { %s408_s24 = scalar_lea.vmem %s36_s16, 1024  ;;  %p413_p12 = scmp.lt.s32.totalorder %s36_s16, %s36_s16 }
  0x1b   :  { %p409_p11 = scmp.ne.s32.totalorder %s36_s16, %s408_s24  ;;  %p414_p13 = scmp.lt.s32.totalorder %s408_s24, %s408_s24 }
  0x1d   :  { %p415_p0 = por %p414_p13, %p413_p12 }
  0x1f   :  { %p416_p1 = pnand %p415_p0, %p409_p11 }
  0x21   :  { %419 = shalt.err (!%p416_p1)
}
  0x22   :  { %41 = dma.hbm_to_vmem [thread:$0]  %s558_s2, 1024, %s36_s16, [#allocation8], %s449_s11, %s449_s11, %s450_s12  }
  0x23   :  { %442 = dma.done.wait [#allocation5], 1024  }
  0x24   :  { %443 = vsyncadd [#allocation5], 4294966272 }
  0x25   :  { %444 = dma.done.wait [#allocation8], 1024  }
  0x26   :  { %445 = vsyncadd [#allocation8], 4294966272  ;;  %v67_v0 = vld [vmem:[#allocation4 + $0x20] sm:$0xff]  ;;  %v68_v1 = vld [vmem:[#allocation4 + $0x28] sm:$0xff]  ;;  %vm60_vm0 = vcmask 123904   ;;  %v452_v24 = vmov 0.0   ;;  %v123_v30 = vlaneseq  ;;  %v104_v36 = vstv %s556_s0 }
  0x27   :  { %v63_v2 = vld [vmem:[#allocation4] sm:$0xff]  ;;  %v77_v3 = vadd.f32 %v68_v1, %v67_v0  ;;  %v64_v4 = vld [vmem:[#allocation4 + $0x8] sm:$0xff]  ;;  %v69_v5 = vld [vmem:[#allocation4 + $0x30] sm:$0xff]  ;;  %61 = vst.msk [vmem:[#allocation2] sm:$0x3] %vm60_vm0, %v452_v24  ;;  %360 = vmatprep.subr.mxu1 %v452_v24  ;;  %v453_v27 = vmov 0.0|0.0  }
  0x28   :  { %v70_v6 = vld [vmem:[#allocation4 + $0x38] sm:$0xff]  ;;  %v71_v7 = vadd.f32 %v64_v4, %v63_v2  ;;  %v65_v8 = vld [vmem:[#allocation4 + $0x10] sm:$0xff]  ;;  %v83_v14 = vld [vmem:[#allocation7] sm:$0xff]  ;;  %365 = vmatprep.subr.bf16.mxu0 %v453_v27  ;;  %vm454_vm1 = vmmov 0   ;;  %s109_s8 = ssub.f32 1.0, %s556_s0  ;;  %v124_v33 = vand.u32 127, %v123_v30 }
  0x29   :  { %v66_v9 = vld [vmem:[#allocation4 + $0x18] sm:$0xff]  ;;  %78 = vadd.xlane.f32.xlu1 %v77_v3  ;;  %v80_v10 = vadd.f32 %v70_v6, %v69_v5  ;;  %v85_v12 = vld [vmem:[#allocation7 + $0x10] sm:$0xff]  ;;  %v84_v15 = vld [vmem:[#allocation7 + $0x8] sm:$0xff]  ;;  %357 = vmatprep.mubr.msk.f32.mxu0 %vm454_vm1, %v452_v24  ;;  %v126_v37 = vshrl.u32 %v123_v30, 7  ;;  %vm134_vm2 = vcmask 130112   ;;  %vm145_vm3 = vcmask 1041409  }
  0x2a   :  { %72 = vadd.xlane.f32.xlu0 %v71_v7  ;;  %v74_v11 = vadd.f32 %v66_v9, %v65_v8  ;;  %v86_v13 = vld [vmem:[#allocation7 + $0x18] sm:$0xff]  ;;  %v91_v17 = vadd.f32 %v84_v15, %v83_v14  ;;  %v89_v18 = vld [vmem:[#allocation7 + $0x30] sm:$0xff]  ;;  %v87_v20 = vld [vmem:[#allocation7 + $0x20] sm:$0xff]  ;;  %362 = vmatprep.mubr.msk.f32.mxu1 %vm454_vm1, %v452_v24  ;;  %v110_v35 = vstv %s109_s8  ;;  %v129_v38 = vadd.s32 4294967288, %v124_v33  ;;  %s455_s15 = smov [#allocation9]  }
  0x2b   :  { %v94_v16 = vadd.f32 %v86_v13, %v85_v12  ;;  %v90_v19 = vld [vmem:[#allocation7 + $0x38] sm:$0xff]  ;;  %v88_v21 = vld [vmem:[#allocation7 + $0x28] sm:$0xff]  ;;  %v127_v47 = vsub.s32 %v124_v33, %v126_v37  ;;  %vm165_vm4 = vcmask 130048   ;;  %vm252_vm5 = vcmask 1041408   ;;  %s333_s16 = sshll.u32 %s455_s15, 4  ;;  %s334_s16 = int_to_ptr.vmem [resolvable:$true] %s333_s16 }
  0x2c   :  { %v100_v22 = vadd.f32 %v90_v19, %v89_v18  ;;  %v97_v23 = vadd.f32 %v88_v21, %v87_v20  ;;  %v156_v25 = vld [vmem:[%s559_s3] sm:$0xff]  ;;  %v157_v26 = vld [vmem:[%s559_s3 + $0x8] sm:$0xff]  ;;  %v132_v45 = vsub.s32 %v129_v38, %v126_v37  ;;  %vm248_vm6 = vcmask 15360   ;;  %p425_p3 = scmp.lt.s32.totalorder %s334_s16, %s334_s16 }
  0x2d   :  { %81 = vadd.xlane.f32.xlu1 %v80_v10  ;;  %v366_v28 = vpack.c.bf16 %v157_v26, %v156_v25  ;;  %v240_v4 = vld [vmem:[%s561_s5] sm:$0x3]  ;;  %s420_s5 = scalar_lea.vmem %s334_s16, 32 }
  0x2e   :  { %75 = vadd.xlane.f32.xlu0 %v74_v11  ;;  %v103_v61 = vld [vmem:[#allocation2] sm:$0x3]  ;;  %361 = vmatpush3.msk.msra.mxu1 %vm252_vm5, %v240_v4  ;;  %p421_p2 = scmp.ne.s32.totalorder %s334_s16, %s420_s5  ;;  %p426_p4 = scmp.lt.s32.totalorder %s420_s5, %s420_s5 }
  0x2f   :  { %367 = vmatpush3.bf16.msra.mxu0 %v366_v28  ;;  %v343_v5 = vld [vmem:[%s560_s4] ss:$0 sm:$0xff] }
  0x30   :  { %v345_v10 = vld [vmem:[%s562_s6] ss:$0 sm:$0xff]  ;;  %p427_p5 = por %p426_p4, %p425_p3 }
  0x31   :  { %95 = vadd.xlane.f32.xlu1 %v94_v16 }
  0x32   :  { %92 = vadd.xlane.f32.xlu0 %v91_v17  ;;  %p428_p6 = pnand %p427_p5, %p421_p2 }
  0x35   :  { %101 = vadd.xlane.f32.xlu1 %v100_v22 }
  0x36   :  { %98 = vadd.xlane.f32.xlu0 %v97_v23 }
  0xb6   :  { %v79_v29 = vpop.xlane.xlu1 %78 }
  0xb7   :  { %v73_v31 = vpop.xlane.xlu0 %72  ;;  %v107_v53 = vmul.f32 %v104_v36, %v79_v29 }
  0xb8   :  { %v105_v42 = vmul.f32 %v104_v36, %v73_v31 }
  0xba   :  { %v82_v32 = vpop.xlane.xlu1 %81 }
  0xbb   :  { %v76_v34 = vpop.xlane.xlu0 %75  ;;  %v108_v50 = vmul.f32 %v104_v36, %v82_v32 }
  0xbc   :  { %v106_v43 = vmul.f32 %v104_v36, %v76_v34 }
  0xbe   :  { %v96_v39 = vpop.xlane.xlu1 %95 }
  0xbf   :  { %v112_v40 = vmul.f32 %v110_v35, %v96_v39  ;;  %v93_v41 = vpop.xlane.xlu0 %92 }
  0xc0   :  { %v111_v44 = vmul.f32 %v110_v35, %v93_v41 }
  0xc1   :  { %v116_v46 = vadd.f32 %v112_v40, %v106_v43 }
  0xc2   :  { %v115_v48 = vadd.f32 %v111_v44, %v105_v42  ;;  %v102_v49 = vpop.xlane.xlu1 %101 }
  0xc3   :  { %v114_v51 = vmul.f32 %v110_v35, %v102_v49  ;;  %v99_v52 = vpop.xlane.xlu0 %98  ;;  %v133_v56 = vrot.slane %v116_v46, %v132_v45 }
  0xc4   :  { %v113_v54 = vmul.f32 %v110_v35, %v99_v52  ;;  %v128_v57 = vrot.slane %v115_v48, %v127_v47 }
  0xc5   :  { %v118_v55 = vadd.f32 %v114_v51, %v108_v50 }
  0xc6   :  { %v117_v58 = vadd.f32 %v113_v54, %v107_v53  ;;  %v135_v62 = vsel %vm134_vm2, %v133_v56, %v128_v57 }
  0xc7   :  { %v143_v59 = vrot.slane %v118_v55, %v132_v45 }
  0xc8   :  { %v139_v60 = vrot.slane %v117_v58, %v127_v47 }
  0xca   :  { %v144_v63 = vsel %vm134_vm2, %v143_v59, %v139_v60 }
  0xcb   :  { %v146_v0 = vsel %vm145_vm3, %v144_v63, %v135_v62 }
  0xcc   :  { %v148_v1 = vadd.f32 %v146_v0, %v103_v61 }
  0xce   :  { %150 = vst.msk [vmem:[#allocation2] sm:$0x3] %vm60_vm0, %v148_v1 }
  0xd5   :  { %v154_v2 = vld [vmem:[#allocation2] sm:$0x3] }
  0xd6   :  { %v155_v3 = vmul.f32 0.00390625, %v154_v2 }
  0xd8   :  { %358 = vmatmul.mubr.msk.f32.vlgmr.msra.gmra.mrb[0].mxu0 %vm165_vm4, %v155_v3 }
 0x1ab   :  { %v235_v6 = vpop.f32.mrb[0].mxu0 }
 0x1ac   :  { %v236_v7 = vadd.f32 %v343_v5, %v235_v6  ;;  %v359_v8 = vpop.f32.mrb[1].mxu0 }
 0x1ae   :  { %v239_v9 = vmax.f32 %v236_v7, 0.0 }
 0x1b0   :  { %363 = vmatmul.mubr.msk.f32.vlgmr.msra.gmra.mrb[0].mxu1 %vm248_vm6, %v239_v9 }
 0x283   :  { %v322_v11 = vpop.f32.mrb[0].mxu1 }
 0x284   :  { %v323_v12 = vadd.f32 %v345_v10, %v322_v11  ;;  %v364_v13 = vpop.f32.mrb[1].mxu1 }
 0x286   :  { %326 = vst.msk [vmem:[#allocation9] sm:$0x3] %vm60_vm0, %v323_v12 }
 0x287   :  { %431 = shalt.err (!%p428_p6)
}
 0x288   :  { %s432_s18 = scalar_lea.hbm %s563_s7, 32 }
 0x289   :  { %p433_p7 = scmp.ne.s32.totalorder %s563_s7, %s432_s18  ;;  %p436_p8 = scmp.lt.u32.totalorder %s432_s18, %s563_s7 }
 0x28b   :  { %p438_p9 = pnand %p436_p8, %p433_p7 }
 0x28d   :  { %441 = shalt.err (!%p438_p9)
}
 0x28e   :  { %336 = dma.vmem_to_hbm [thread:$0]  %s334_s16, 32, %s563_s7, [#allocation6]  }
 0x28f   :  { %446 = dma.done.wait [#allocation6], 32  }
 0x290   :  { %447 = vsyncadd [#allocation6], 4294967264 }
 0x291   :  { %340 = vsyncpa [#allocation5], 1 }
 0x292   :  { %341 = vsyncpa [#allocation8], 1 }
 0x293   :  { %342 = vsyncpa [#allocation6], 1 }

</bundles_post_ra>
